<compile_context>
chip_gen: v7x
topology: tpu7x:2x2x1
jax: 0.10.0
libtpu: 0.0.40
codegen_flags: <defaults>
</compile_context>

<pallas_src>
import functools

import jax
import jax.numpy as jnp
from jax.experimental import pallas as pl
from jax.experimental.pallas import tpu as pltpu


def _lrn_kernel(band_ref, x_ref, o_ref, *, local_size, alpha, beta):
    # band_ref: (C, C) f32 banded matrix with (alpha/local_size) on |i-j| <= pad.
    # x_ref / o_ref: (1, C, T_HW) block in VMEM.
    x = x_ref[0].astype(jnp.float32)          # (C, T_HW)
    sq = x * x

    if local_size == 1:
        # Window of one tap: avoid the matmul entirely.
        a = (alpha / float(local_size)) * sq
    else:
        # MXU: banded C x C matmul performs the cross-channel window sum; the
        # alpha/local_size scale is folded into the band (no extra VALU muls).
        a = jnp.dot(band_ref[...], sq, preferred_element_type=jnp.float32)

    # out = x / (1 + a)**beta  ==  x * exp(-beta * log(1 + a))
    # (log(1+a) matches the reference's pow(1+a, beta) rounding of the "1+" term.)
    o_ref[0] = (x * jnp.exp((-beta) * jnp.log(1.0 + a))).astype(o_ref.dtype)


def _pick_hw_tile(hw, c, n):
    """Lane tile: multiple of 128, block bytes ~<=2 MiB, >=4 total grid steps."""
    if hw <= 128:
        return hw  # full-extent lane block (legal even when not a 128-multiple)
    # Cap block bytes (c * t * 4) at ~2 MiB; lane tile in [128, 1024].
    cap = max(128, ((2 * 1024 * 1024) // (4 * c)) // 128 * 128)
    t = min(1024, cap)
    hw_ceil = ((hw + 127) // 128) * 128
    t = min(t, hw_ceil)
    # Guarantee enough grid steps for megacore sharding (v7x: 2 TCs) / pipelining.
    while n * ((hw + t - 1) // t) < 4 and t > 128:
        t -= 128
    return t


def _band_matrix(c, local_size, alpha):
    pad = (local_size - 1) // 2
    i = jnp.arange(c, dtype=jnp.int32)[:, None]
    j = jnp.arange(c, dtype=jnp.int32)[None, :]
    return jnp.where(jnp.abs(i - j) <= pad,
                     jnp.float32(alpha / float(local_size)),
                     jnp.float32(0.0))


def lrn_pallas(x, local_size=1, alpha=1.0, beta=0.75):
    """x: (N, C, H, W), NCHW layout. Returns same shape/dtype."""
    assert local_size % 2 == 1, "only odd local_size matches PyTorch AvgPool3d here"
    N, C, H, W = x.shape
    HW = H * W
    x_flat = x.reshape(N, C, HW)

    t_hw = _pick_hw_tile(HW, C, N)
    n_t = pl.cdiv(HW, t_hw)

    band = _band_matrix(C, local_size, alpha)

    kernel = functools.partial(
        _lrn_kernel, local_size=local_size, alpha=float(alpha), beta=float(beta)
    )

    total = N * C * H * W
    cost = pl.CostEstimate(
        flops=(2 * local_size + 6) * total,
        transcendentals=2 * total,                    # exp + log per element
        bytes_accessed=2 * x.dtype.itemsize * total,  # read + write
    )

    block_bytes = C * t_hw * 4
    band_bytes = C * C * 4
    vmem_limit = min(64 * 1024 * 1024,
                     max(16 * 1024 * 1024, 6 * block_bytes + 2 * band_bytes))

    out_flat = pl.pallas_call(
        kernel,
        out_shape=jax.ShapeDtypeStruct((N, C, HW), x.dtype),
        grid_spec=pltpu.PrefetchScalarGridSpec(
            num_scalar_prefetch=0,
            grid=(N, n_t),
            in_specs=[
                # Constant band: fixed block index -> fetched once, stays resident.
                pl.BlockSpec((C, C), lambda n, t: (0, 0)),
                pl.BlockSpec((1, C, t_hw), lambda n, t: (n, 0, t)),
            ],
            out_specs=pl.BlockSpec((1, C, t_hw), lambda n, t: (n, 0, t)),
        ),
        compiler_params=pltpu.CompilerParams(
            dimension_semantics=("parallel", "parallel"),
            vmem_limit_bytes=vmem_limit,
        ),
        cost_estimate=cost,
    )(band, x_flat)

    return out_flat.reshape(N, C, H, W)


def lrn_reference(x, local_size=1, alpha=1.0, beta=0.75):
    """Pure-JAX reference of the PyTorch forward (ACROSS_CHANNELS=True)."""
    N, C, H, W = x.shape
    pad = (local_size - 1) // 2
    sq = x * x
    sq_pad = jnp.pad(sq, ((0, 0), (pad, pad), (0, 0), (0, 0)))
    acc = jnp.zeros_like(x)
    for d in range(local_size):
        acc = acc + sq_pad[:, d : d + C]
    avg = acc / float(local_size)
    div = jnp.power(1.0 + alpha * avg, beta)
    return x / div


if __name__ == "__main__":
    key = jax.random.PRNGKey(0)
    N, C, H, W = 2, 4, 16, 16
    x = jax.random.normal(key, (N, C, H, W), dtype=jnp.float32)

    # Classic AlexNet-style LRN hyperparameters (exercises the channel window,
    # including the zero-padded edge channels since pad=2 with C=4).
    local_size, alpha, beta = 5, 1e-4, 0.75

    out = lrn_pallas(x, local_size=local_size, alpha=alpha, beta=beta)
    out = jax.block_until_ready(out)

    ref = lrn_reference(x, local_size=local_size, alpha=alpha, beta=beta)
    assert out.shape == x.shape and out.dtype == x.dtype
    assert jnp.allclose(out, ref, atol=1e-5, rtol=1e-5), "mismatch vs reference"

    # Also sanity-check the module's default hyperparameters (local_size=1).
    out_def = jax.block_until_ready(lrn_pallas(x))
    ref_def = lrn_reference(x)
    assert jnp.allclose(out_def, ref_def, atol=1e-5, rtol=1e-5)

    print("KERNEL_OK")
</pallas_src>

<mosaic_0001>
module attributes {stable_mosaic.version = 11 : i64} {
  func.func @_lrn_kernel(%arg0: i32, %arg1: i32, %arg2: memref<4x4xf32, #tpu.memory_space<vmem>>, %arg3: memref<1x4x128xf32, #tpu.memory_space<vmem>>, %arg4: memref<1x4x128xf32, #tpu.memory_space<vmem>>) attributes {dimension_semantics = [#tpu.dimension_semantics<parallel>, #tpu.dimension_semantics<parallel>], iteration_bounds = array<i64: 2, 2>, scalar_prefetch = 0 : i64, scratch_operands = 0 : i64, tpu.core_type = #tpu.core_type<tc>, window_params = [{pipeline_mode = #tpu.pipeline_mode<synchronous>, transform_indices = @transform_0, window_bounds = array<i64: 4, 4>}, {transform_indices = @transform_1, window_bounds = array<i64: 1, 4, 128>}, {transform_indices = @transform_2, window_bounds = array<i64: 1, 4, 128>}]} {
    %c0 = arith.constant 0 : index
    %c0_0 = arith.constant 0 : index
    %c0_1 = arith.constant 0 : index
    %0 = vector.load %arg3[%c0, %c0_0, %c0_1] : memref<1x4x128xf32, #tpu.memory_space<vmem>>, vector<1x4x128xf32>
    %1 = vector.shape_cast %0 : vector<1x4x128xf32> to vector<4x128xf32>
    %2 = arith.mulf %1, %1 : vector<4x128xf32>
    %c0_2 = arith.constant 0 : index
    %c0_3 = arith.constant 0 : index
    %3 = vector.load %arg2[%c0_2, %c0_3] : memref<4x4xf32, #tpu.memory_space<vmem>>, vector<4x4xf32>
    %cst = arith.constant dense<0.000000e+00> : vector<4x128xf32>
    %4 = tpu.matmul %3, %2, %cst {dimension_numbers = #tpu.dot_dimension_numbers<[1], [0], [0], [1], [0, 0, 1, 1], [], []>} : vector<4x4xf32>, vector<4x128xf32>, vector<4x128xf32> -> vector<4x128xf32>
    %cst_4 = arith.constant 1.000000e+00 : f32
    %5 = vector.broadcast %cst_4 : f32 to vector<4x128xf32>
    %6 = arith.addf %5, %4 : vector<4x128xf32>
    %7 = math.log %6 : vector<4x128xf32>
    %cst_5 = arith.constant -7.500000e-01 : f32
    %8 = vector.broadcast %cst_5 : f32 to vector<4x128xf32>
    %9 = arith.mulf %8, %7 : vector<4x128xf32>
    %10 = math.exp %9 : vector<4x128xf32>
    %11 = arith.mulf %1, %10 : vector<4x128xf32>
    %c0_6 = arith.constant 0 : index
    %c0_7 = arith.constant 0 : index
    %c0_8 = arith.constant 0 : index
    %12 = vector.load %arg4[%c0_6, %c0_7, %c0_8] : memref<1x4x128xf32, #tpu.memory_space<vmem>>, vector<1x4x128xf32>
    %13 = vector.shape_cast %12 : vector<1x4x128xf32> to vector<4x128xf32>
    %14 = vector.shape_cast %11 : vector<4x128xf32> to vector<1x4x128xf32>
    tpu.vector_store %arg4[%c0_6, %c0_7, %c0_8], %14 {strides = array<i32>} : memref<1x4x128xf32, #tpu.memory_space<vmem>>, vector<1x4x128xf32>,
    return
  }
  func.func @transform_0(%arg0: i32, %arg1: i32) -> (i32, i32) {
    %c0_i32 = arith.constant 0 : i32
    %c0_i32_0 = arith.constant 0 : i32
    %c0_i32_1 = arith.constant 0 : i32
    return %c0_i32, %c0_i32_0 : i32, i32
  }
  func.func @transform_1(%arg0: i32, %arg1: i32) -> (i32, i32, i32) {
    %c0_i32 = arith.constant 0 : i32
    %c0_i32_0 = arith.constant 0 : i32
    return %arg0, %c0_i32, %arg1 : i32, i32, i32
  }
  func.func @transform_2(%arg0: i32, %arg1: i32) -> (i32, i32, i32) {
    %c0_i32 = arith.constant 0 : i32
    %c0_i32_0 = arith.constant 0 : i32
    return %arg0, %c0_i32, %arg1 : i32, i32, i32
  }
}

</mosaic_0001>

<bundles_post_ra>
// kernel: tpu_custom_call.1
= control target key start
LH: loop header
LB: loop body
LE: loop exit
PB: predicated region body
PF: predicated region fallthrough
CT: control target
= control target key end

     0   :  { %s932_s0 = inlined_call_operand.hbm [shape: f32[4,4], index: 0, kind: input, shape index: {}]   ;;  %s933_s1 = inlined_call_operand.hbm [shape: f32[2,4,256], index: 1, kind: input, shape index: {}]   ;;  %s934_s2 = inlined_call_operand.hbm [shape: f32[2,4,256], index: 2, kind: output, shape index: {}]  }
   0x1   :  { %941 = sst [smem:[#allocation13_spill]] %s932_s0 }
   0x2   :  { %7 = vsyncpa [#allocation3], 0 }
   0x3   :  { %8 = vsyncpa [#allocation6], 0 }
   0x4   :  { %10 = vsyncpa [#allocation6 + $0x1], 0 }
   0x5   :  { %11 = vsyncpa [#allocation4], 0 }
   0x6   :  { %13 = vsyncpa [#allocation4 + $0x1], 0  ;;  %s694_s9 = smov 0   ;;  %s696_s10 = smov 0  }
   0x7   :  { %s698_s11 = smov 0   ;;  %s700_s12 = smov 0  }
   0x8   :  { %s702_s13 = smov 0   ;;  %s704_s14 = smov 0  }
   0x9   :  { %s706_s15 = smov 0   ;;  %s708_s16 = smov 0  }
   0xa LB: > { %s391_s17 = sadd.s32 4294967295, %s672_s16   ;;  %s392_s18 = sadd.s32 4294967294, %s672_s16   ;;  %s672_s16 = sphi %s708_s16, %s19_s16   ;;  %s668_s15 = sphi %s706_s15, %s967_s15   ;;  %s664_s14 = sphi %s704_s14, %s966_s14   ;;  %s660_s13 = sphi %s702_s13, %s965_s13   ;;  %s656_s12 = sphi %s700_s12, %s964_s12   ;;  %s652_s11 = sphi %s698_s11, %s963_s11   ;;  %s648_s10 = sphi %s696_s10, %s962_s10   ;;  %s644_s9 = sphi %s694_s9, %s961_s9  }
   0xb   : > { %p74_p0 = scmp.ne.s32.totalorder %s648_s10, %s644_s9  ;;  %p738_p1 = scmp.eq.s32.totalorder %s391_s17, 0 }
   0xc   : > { %p742_p2 = scmp.eq.s32.totalorder %s391_s17, 3  ;;  %p106_p3 = scmp.eq.s32.totalorder %s392_s18, 3 }
   0xd   : > { %s942_s19 = scalar_select %p738_p1, 1, 0 }
   0xe   : > { %s943_s20 = scalar_select %p742_p2, 1, 0 }
   0xf   : > { %p748_p4 = por %p738_p1, %p74_p0  ;;  %p393_p5 = scmp.ge.s32.totalorder %s672_s16, 1 }
  0x10   : > { %p753_p6 = por %p106_p3, %p74_p0  ;;  %p113_p7 = scmp.lt.s32.totalorder %s672_s16, 5 }
  0x11   : > { %s944_s21 = scalar_select %p748_p4, 1, 0 }
  0x12   : > { %s945_s22 = scalar_select %p753_p6, 1, 0 }
  0x13   : > { %p758_p8 = pnand %p393_p5, %p113_p7  ;;  %s674_s24 = smov [#allocation2]  }
  0x14   : > { %946 = sst [smem:[#allocation11_spill]] %s945_s22  ;;  %s126_s25 = sshll.u32 %s674_s24, 4  ;;  %s127_s25 = int_to_ptr.vmem [resolvable:$true] %s126_s25 }
  0x15   : > { %s947_s23 = scalar_select %p758_p8, 1, 0 }
  0x16   : > { %p425_p9 = pneg %p758_p8  ;;  %s28_s27 = sadd.s32 1, %s664_s14 }
  0x17   : > { %s949_s0 = sld [smem:[#allocation13_spill]] }
  0x18   : > { %p766_p10 = pnand %p425_p9, %p738_p1 }
  0x1a   : > { %p514_p12 = pneg %p766_p10 }
  0x1d   : > { %s512_s30 = scalar_lea.hbm %s949_s0, 64 }
  0x1e   : > { %p513_p11 = scmp.ne.s32.totalorder %s949_s0, %s512_s30  ;;  %p519_p3 = scmp.lt.u32.totalorder %s512_s30, %s949_s0 }
  0x20   : > { %p515_p13 = pnand %p514_p12, %p513_p11 }
  0x22   : > { %p516_p0 = pneg %p515_p13 }
  0x24   : > { %p521_p5 = pnand %p519_p3, %p516_p0 }
  0x26   : > { %524 = shalt.err (!%p521_p5)
}
  0x27   : > { %s525_s7 = scalar_lea.vmem %s127_s25, 64  ;;  %p533_p4 = scmp.lt.s32.totalorder %s127_s25, %s127_s25 }
  0x28   : > { %p526_p7 = scmp.ne.s32.totalorder %s127_s25, %s525_s7  ;;  %p534_p1 = scmp.lt.s32.totalorder %s525_s7, %s525_s7 }
  0x2a   : > { %p528_p9 = pnand %p526_p7, %p514_p12  ;;  %p535_p8 = por %p534_p1, %p533_p4 }
  0x2c   : > { %p529_p6 = pneg %p528_p9 }
  0x2e   : > { %p536_p2 = pnand %p535_p8, %p529_p6 }
  0x30   : > { %539 = shalt.err (!%p536_p2)
}
  0x31   : > { %428 = dma.hbm_to_vmem [thread:$0]  (!%p766_p10), %s949_s0, 64, %s127_s25, [#allocation3]  }
  0x32   : > { %p29_p1 = scmp.ge.s32.totalorder %s28_s27, 2  ;;  %s31_s18 = sadd.s32 1, %s668_s15 }
  0x33   : > { %s61_s24 = sadd.s32 1, %s652_s11  ;;  %p68_p2 = scmp.ne.s32.totalorder %s652_s11, %s648_s10 }
  0x34   : > { %s969_s27 = smov (%p29_p1, %s28_s27), 0  ;;  %s971_s18 = smov (!%p29_p1, %s31_s18), %s668_s15 }
  0x35   : > { %950 = sst [smem:[#allocation12_spill]] %s969_s27  ;;  %s57_s26 = ssub.s32 %s664_s14, %s969_s27 }
  0x36   : > { %p69_p4 = scmp.eq.s32.totalorder %s672_s16, 0  ;;  %p33_p6 = scmp.ge.s32.totalorder %s971_s18, 2 }
  0x37   : > { %p951_p8 = scmp.ne.s32.totalorder %s943_s20, 0  ;;  %p438_p12 = scmp.lt.s32.totalorder %s672_s16, 4 }
  0x38   : > { %p803_p10 = por %p69_p4, %p68_p2  ;;  %s973_s18 = smov (%p33_p6, %s971_s18), 0 }
  0x39   : > { %p799_p11 = por %p951_p8, %p68_p2  ;;  %s137_s29 = sand.u32 1, %s652_s11  }
  0x3a   : > { %s397_s30 = sshll.u32 %s668_s15, 1  ;;  %s56_s3 = ssub.s32 %s668_s15, %s973_s18 }
  0x3b   : > { %s58_s4 = sor.u32 %s57_s26, %s56_s3  ;;  %s396_s5 = sshll.u32 %s137_s29, 2 }
  0x3c   : > { %p59_p13 = scmp.eq.s32.totalorder %s58_s4, 0  ;;  %s146_s20 = sadd.s32 %s664_s14, %s397_s30 }
  0x3d   : > { %s141_s6 = scalar_lea.vmem [#allocation5], %s396_s5  ;;  %s398_s17 = sshll.u32 %s146_s20, 6 }
  0x3e   : > { %s150_s7 = sshll.u32 %s141_s6, 4  ;;  %s823_s22 = scalar_lea.hbm %s933_s1, %s398_s17  ;;  %s818_s7 = int_to_ptr.vmem [resolvable:$true] %s150_s7 }
  0x3f   : > { %s816_s8 = scalar_select %p59_p13, %s652_s11, %s61_s24  }
  0x40   : > { %p829_p0 = pnand %p438_p12, %p803_p10  ;;  %s138_s24 = scalar_lea.sflag [#allocation6], %s137_s29 }
  0x41   : > { %s540_s30 = scalar_lea.hbm %s823_s22, 64  ;;  %s545_s25 = scalar_lea.hbm %s933_s1, 256 }
  0x42   : > { %p541_p3 = scmp.ne.s32.totalorder %s823_s22, %s540_s30  ;;  %p542_p5 = pneg %p829_p0 }
  0x43   : > { %p546_p1 = scmp.lt.u32.totalorder %s823_s22, %s933_s1  ;;  %p547_p2 = scmp.lt.u32.totalorder %s545_s25, %s540_s30 }
  0x44   : > { %p543_p7 = pnand %p542_p5, %p541_p3  ;;  %p549_p6 = scmp.lt.u32.totalorder %s540_s30, %s823_s22 }
  0x45   : > { %p548_p4 = por %p547_p2, %p546_p1 }
  0x46   : > { %p544_p9 = pneg %p543_p7 }
  0x47   : > { %p550_p8 = por %p549_p6, %p548_p4 }
  0x49   : > { %p551_p10 = pnand %p550_p8, %p544_p9 }
  0x4b   : > { %554 = shalt.err (!%p551_p10)
}
  0x4c   : > { %s555_s29 = scalar_lea.vmem %s818_s7, 64  ;;  %s675_s5 = smov [#allocation5]  }
  0x4d   : > { %p556_p12 = scmp.ne.s32.totalorder %s818_s7, %s555_s29  ;;  %s560_s20 = sshll.u32 %s675_s5, 4  ;;  %s561_s20 = int_to_ptr.vmem [resolvable:$false] %s560_s20 }
  0x4e   : > { %s562_s6 = scalar_lea.vmem %s561_s20, 128  ;;  %p563_p7 = scmp.lt.s32.totalorder %s818_s7, %s561_s20 }
  0x4f   : > { %p558_p13 = pnand %p556_p12, %p542_p5  ;;  %p564_p1 = scmp.lt.s32.totalorder %s562_s6, %s555_s29 }
  0x51   : > { %p559_p3 = pneg %p558_p13  ;;  %p565_p2 = por %p564_p1, %p563_p7 }
  0x53   : > { %p566_p4 = pnand %p565_p2, %p559_p3 }
  0x55   : > { %569 = shalt.err (!%p566_p4)
}
  0x56   : > { %432 = dma.hbm_to_vmem [thread:$0]  (!%p829_p0), %s823_s22, 64, %s818_s7, %s138_s24  }
  0x57   : > { %p955_p9 = scmp.ne.s32.totalorder %s947_s23, 0 }
  0x58   : > { %p956_p5 = scmp.ne.s32.totalorder (!%p955_p9), %s942_s19, 0 }
  0x59   : > { %159 = sbr.rel (%p955_p9) target bundleno = 363 (0x16b), region = 28 }
  0x60   : > { %631 = dma.done.wait (%p956_p5), [#allocation3], 64  }
  0x61   : > { %633 = vsyncadd (%p956_p5), [#allocation3], 4294967232  ;;  %s865_s17 = sand.u32 1, %s648_s10   ;;  %p957_p6 = scmp.ne.s32.totalorder %s944_s21, 0 }
  0x62   : > { %s401_s30 = sshll.u32 %s865_s17, 2  ;;  %s166_s26 = scalar_lea.sflag [#allocation6], %s865_s17 }
  0x63   : > { %s169_s0 = scalar_lea.vmem [#allocation5], %s401_s30 }
  0x64   : > { %635 = dma.done.wait (%p957_p6), %s166_s26, 64  }
  0x65   : > { %637 = vsyncadd (%p957_p6), %s166_s26, 4294967232  ;;  %v676_v0 = vmov 0.0   ;;  %vm677_vm0 = vmmov 0   ;;  %v190_v1 = vld [vmem:[%s169_s0] sm:$0xf]  ;;  %vm197_vm1 = vcmask 1043456  }
  0x66   : > { %412 = vmatprep.subr.mxu0 %v676_v0  ;;  %414 = vmatprep.mubr.msk.f32.mxu0 %vm677_vm0, %v676_v0  ;;  %v191_v2 = vmul.f32 %v190_v1, %v190_v1  ;;  %v192_v3 = vld [vmem:[#allocation2] sm:$0xf]  ;;  %vm193_vm2 = vcmask 31744   ;;  %s406_s19 = sshll.u32 %s660_s13, 1  ;;  %s189_s23 = scalar_lea.vmem [#allocation7], %s401_s30 }
  0x67   : > { %s290_s21 = sadd.s32 %s656_s12, %s406_s19  ;;  %s294_s7 = sshll.u32 %s189_s23, 4  ;;  %s880_s7 = int_to_ptr.vmem [resolvable:$true] %s294_s7 }
  0x68   : > { %413 = vmatpush3.msk.msra.mxu0 %vm197_vm1, %v191_v2  ;;  %s407_s22 = sshll.u32 %s290_s21, 6  ;;  %s279_s3 = scalar_lea.sflag [#allocation4], %s865_s17 }
  0x69   : > { %415 = vmatmul.mubr.msk.f32.vlgmr.msra.gmra.mrb[0].mxu0 %vm193_vm2, %v192_v3  ;;  %s878_s25 = scalar_lea.hbm %s934_s2, %s407_s22  ;;  %s570_s4 = scalar_lea.vmem %s880_s7, 64 }
  0x6a   : > { %p571_p0 = scmp.ne.s32.totalorder %s880_s7, %s570_s4  ;;  %s678_s12 = smov [#allocation7]  }
  0x6b   : > { %s574_s13 = sshll.u32 %s678_s12, 4  ;;  %s575_s13 = int_to_ptr.vmem [resolvable:$false] %s574_s13 }
  0x6c   : > { %p572_p8 = pnand %p571_p0, %p799_p11  ;;  %s576_s29 = scalar_lea.vmem %s575_s13, 128 }
  0x6d   : > { %p577_p12 = scmp.lt.s32.totalorder %s880_s7, %s575_s13  ;;  %p578_p13 = scmp.lt.s32.totalorder %s576_s29, %s570_s4 }
  0x6e   : > { %p573_p10 = pneg %p572_p8 }
  0x6f   : > { %p579_p3 = por %p578_p13, %p577_p12 }
  0x71   : > { %p580_p7 = pnand %p579_p3, %p573_p10 }
 0x13c   : > { %v267_v4 = vpop.f32.mrb[0].mxu0 }
 0x13d   : > { %v268_v5 = vadd.f32 1.0, %v267_v4  ;;  %v416_v6 = vpop.f32.mrb[1].mxu0 }
 0x13f   : > { %508 = vlog2.f32 %v268_v5 }
 0x149   : > { %v509_v7 = vpop.eup %508 }
 0x14a   : > { %v272_v8 = vmul.f32 0.6931472, %v509_v7 }
 0x14c   : > { %v273_v9 = vmul.f32 -0.75, %v272_v8 }
 0x14e   : > { %v274_v10 = vmul.f32 1.442695, %v273_v9 }
 0x150   : > { %510 = vpow2.f32 %v274_v10 }
 0x15a   : > { %v511_v11 = vpop.eup %510 }
 0x15b   : > { %v276_v12 = vmul.f32 %v511_v11, %v190_v1 }
 0x15d   : > { %277 = vst [vmem:[%s189_s23] sm:$0xf] %v276_v12 }
 0x15e   : > { %583 = shalt.err (!%p580_p7)
}
 0x15f   : > { %s584_s5 = scalar_lea.hbm %s878_s25, 64  ;;  %s588_s17 = scalar_lea.hbm %s934_s2, 256 }
 0x160   : > { %p585_p1 = scmp.ne.s32.totalorder %s878_s25, %s584_s5  ;;  %p589_p9 = scmp.lt.u32.totalorder %s878_s25, %s934_s2 }
 0x161   : > { %p590_p5 = scmp.lt.u32.totalorder %s588_s17, %s584_s5  ;;  %p592_p0 = scmp.lt.u32.totalorder %s584_s5, %s878_s25 }
 0x162   : > { %p586_p2 = pnand %p585_p1, %p799_p11 }
 0x163   : > { %p591_p6 = por %p590_p5, %p589_p9 }
 0x164   : > { %p587_p4 = pneg %p586_p2 }
 0x165   : > { %p593_p8 = por %p592_p0, %p591_p6 }
 0x167   : > { %p594_p10 = pnand %p593_p8, %p587_p4 }
 0x169   : > { %597 = shalt.err (!%p594_p10)
}
 0x16a   : > { %423 = dma.vmem_to_hbm [thread:$0]  (%p799_p11), %s880_s7, 64, %s878_s25, %s279_s3  }
 0x16b PF: > { %s958_s0 = sld [smem:[#allocation11_spill]]  ;;  %p440_p12 = scmp.ge.s32.totalorder %s672_s16, 2 }
 0x16c   : > { %s306_s19 = sand.u32 1, %s644_s9  }
 0x16d   : > { %s307_s21 = scalar_lea.sflag [#allocation4], %s306_s19 }
 0x171   : > { %p959_p13 = scmp.ne.s32.totalorder %s958_s0, 0 }
 0x173   : > { %p434_p3 = pnand %p440_p12, %p959_p13 }
 0x175   : > { %639 = dma.done.wait (!%p434_p3), %s307_s21, 64  }
 0x176   : > { %641 = vsyncadd (!%p434_p3), %s307_s21, 4294967232  ;;  %s19_s16 = sadd.s32 1, %s672_s16   ;;  %s960_s28 = sld [smem:[#allocation12_spill]] }
 0x177   : > { %p16_p7 = scmp.ge.s32.totalorder %s19_s16, 6   ;;  %s961_s9 = smov %s648_s10 }
 0x178   : > { %s962_s10 = smov %s652_s11  ;;  %s963_s11 = smov %s816_s8 }
 0x179   : > { %s964_s12 = smov %s664_s14  ;;  %s965_s13 = smov %s668_s15 }
 0x17a   : > { %s967_s15 = smov %s973_s18  ;;  %18 = sbr.rel (!%p16_p7) target bundleno = 10 (0xa), region = 78 }
 0x17c   : > { %s966_s14 = smov %s960_s28 }
 0x181   :  { %312 = vsyncpa [#allocation3], 1 }
 0x182   :  { %314 = vsyncpa [#allocation3 + $0x1], 1 }
 0x183   :  { %315 = vsyncpa [#allocation6], 1 }
 0x184   :  { %317 = vsyncpa [#allocation6 + $0x1], 1 }
 0x185   :  { %318 = vsyncpa [#allocation4], 1 }
 0x186   :  { %320 = vsyncpa [#allocation4 + $0x1], 1 }

</bundles_post_ra>
